<compile_context>
chip_gen: v6e
topology: v6e:2x2x1
jax: 0.10.0
libtpu: 0.0.40
codegen_flags: <defaults>
</compile_context>

<pallas_src>
import jax
import jax.numpy as jnp
import numpy as np
from jax.experimental import pallas as pl
from jax.experimental.pallas import tpu as pltpu


def _ple_kernel(x_ref, expand_ref, left_ref, thr_ref, nxt_ref, invw_ref, out_ref):
    x = x_ref[...]                                                     # (TN, F)
    # Broadcast x[:, f] into its D output columns directly in lane-dense (TN, F*D)
    # layout via the idle MXU: expand[f, f*D + d] == 1.
    xb = jnp.dot(x, expand_ref[...], preferred_element_type=jnp.float32)   # (TN, F*D)

    left = left_ref[...]        # (1, F*D)  edges[f, d]
    thr = thr_ref[...]          # (1, F*D)  edges[f, d]   (-inf where d == 0)
    nxt = nxt_ref[...]          # (1, F*D)  edges[f, d+1] (+inf where d == D-1)
    invw = invw_ref[...]        # (1, F*D)  1 / (edges[f, d+1] - edges[f, d])

    filled = xb >= nxt                               # bin d strictly below the selected bin k
    active = jnp.logical_and(xb < nxt, xb >= thr)    # bin d == k
    ratio = (xb - left) * invw                       # unclipped, matches reference

    one = jnp.ones((), jnp.float32)
    zero = jnp.zeros((), jnp.float32)
    out = jnp.where(filled, one, jnp.where(active, ratio, zero))
    out_ref[...] = out.astype(out_ref.dtype)


def _pick_tile_n(n, f, d, budget_bytes=20 << 20, max_tile=1024):
    """Rows per grid step: fill ~budget_bytes of double-buffered VMEM windows."""
    fd = f * d
    n_up = ((n + 7) // 8) * 8
    bytes_per_row = 8 * (fd + f)          # f32, double-buffered out window + x window
    t = min(max_tile, max(1, budget_bytes // bytes_per_row), n_up)
    if n_up >= 64:                        # keep a few grid steps (dual-TC v7x / pipelining)
        t = min(t, max(8, (n_up // 4 // 8) * 8))
    return max(8, (t // 8) * 8)


def piecewise_linear_encoder(x, bin_edges, *, tile_n=None):
    """x: (N, F) float32; bin_edges: (F, n_bins+1) float32, sorted per row.
    Returns (N, F, n_bins) float32 == PiecewiseLinearEncoder(stack=True)(x)."""
    x = jnp.asarray(x, jnp.float32)
    bin_edges = jnp.asarray(bin_edges, jnp.float32)
    n, f = x.shape
    e = bin_edges.shape[1]
    d = e - 1
    fd = f * d

    if tile_n is None:
        tile_n = _pick_tile_n(n, f, d)

    num_tiles = pl.cdiv(n, tile_n)
    n_pad = num_tiles * tile_n
    if n_pad != n:
        x = jnp.pad(x, ((0, n_pad - n), (0, 0)))   # tail rows computed then sliced off

    # Per-(feature, bin) constant tables, flattened to the lane-dense F*D layout (tiny, host/XLA side).
    left = bin_edges[:, :d]                               # (F, D)
    right = bin_edges[:, 1:]                              # (F, D)
    inv_width = 1.0 / (right - left)                      # NB: zero-width bins -> inf, as in torch ref
    d_idx = jnp.arange(d)[None, :]
    thr = jnp.where(d_idx == 0, -jnp.inf, left)           # first bin always reachable
    nxt = jnp.where(d_idx == d - 1, jnp.inf, right)       # last bin never "filled"

    left_flat = left.reshape(1, fd)
    thr_flat = thr.reshape(1, fd)
    nxt_flat = nxt.reshape(1, fd)
    invw_flat = inv_width.reshape(1, fd)

    # 0/1 matrix repeating each feature column D times: (F, F*D).
    expand = jnp.repeat(jnp.eye(f, dtype=jnp.float32), d, axis=1)

    row_spec = pl.BlockSpec((1, fd), lambda i: (0, 0))

    out2d = pl.pallas_call(
        _ple_kernel,
        out_shape=jax.ShapeDtypeStruct((n_pad, fd), jnp.float32),
        grid_spec=pltpu.PrefetchScalarGridSpec(
            num_scalar_prefetch=0,
            grid=(num_tiles,),
            in_specs=[
                pl.BlockSpec((tile_n, f), lambda i: (i, 0)),   # x rows
                pl.BlockSpec((f, fd), lambda i: (0, 0)),       # expand matrix (grid-invariant)
                row_spec, row_spec, row_spec, row_spec,        # edge tables (grid-invariant)
            ],
            out_specs=pl.BlockSpec((tile_n, fd), lambda i: (i, 0)),
        ),
        compiler_params=pltpu.CompilerParams(
            dimension_semantics=("parallel",),
            # Raise v5e's 16 MiB scoped default; stays below v7x's 64 MiB physical VMEM.
            vmem_limit_bytes=48 * 1024 * 1024,
        ),
    )(x, expand, left_flat, thr_flat, nxt_flat, invw_flat)

    if n_pad != n:
        out2d = out2d[:n]
    # (N, F*D) -> (N, F, D) is free on contiguous HBM (metadata-only reshape).
    return out2d.reshape(n, f, d)


def _reference_ple(x, edges):
    """NumPy reference mirroring the torch code (bucketize right=True + LVR encoding)."""
    x = np.asarray(x)
    edges = np.asarray(edges)
    n, f = x.shape
    e = edges.shape[1]
    d = e - 1
    out = np.zeros((n, f, d), dtype=np.float32)
    for i in range(n):
        for j in range(f):
            ed = edges[j]
            k = int(np.sum(ed[1:e - 1] <= x[i, j]))        # bin index in [0, d-1]
            ratio = (x[i, j] - ed[k]) / (ed[k + 1] - ed[k])
            out[i, j, :k] = 1.0
            out[i, j, k] = ratio
    return out


if __name__ == "__main__":
    key = jax.random.PRNGKey(0)

    n_objects, n_features, n_bins = 16, 4, 8

    # Deterministic, sorted bin edges per feature (what the module's __init__ stores).
    edges_np = np.stack(
        [np.linspace(-2.0 - 0.1 * j, 2.0 + 0.1 * j, n_bins + 1, dtype=np.float32)
         for j in range(n_features)],
        axis=0,
    )  # (F, n_bins+1)

    x = jax.random.normal(key, (n_objects, n_features), dtype=jnp.float32) * 1.5
    bin_edges = jnp.asarray(edges_np)

    out = piecewise_linear_encoder(x, bin_edges)
    out = jax.block_until_ready(out)

    ref = _reference_ple(np.asarray(x), edges_np)
    np.testing.assert_allclose(np.asarray(out), ref, rtol=1e-5, atol=1e-5)

    print("KERNEL_OK")
</pallas_src>

<mosaic_0001>
module attributes {stable_mosaic.version = 11 : i64} {
  func.func @_ple_kernel(%arg0: i32, %arg1: memref<16x4xf32, #tpu.memory_space<vmem>>, %arg2: memref<4x32xf32, #tpu.memory_space<vmem>>, %arg3: memref<1x32xf32, #tpu.memory_space<vmem>>, %arg4: memref<1x32xf32, #tpu.memory_space<vmem>>, %arg5: memref<1x32xf32, #tpu.memory_space<vmem>>, %arg6: memref<1x32xf32, #tpu.memory_space<vmem>>, %arg7: memref<16x32xf32, #tpu.memory_space<vmem>>) attributes {dimension_semantics = [#tpu.dimension_semantics<parallel>], iteration_bounds = array<i64: 1>, scalar_prefetch = 0 : i64, scratch_operands = 0 : i64, tpu.core_type = #tpu.core_type<tc>, window_params = [{transform_indices = @transform_0, window_bounds = array<i64: 16, 4>}, {pipeline_mode = #tpu.pipeline_mode<synchronous>, transform_indices = @transform_1, window_bounds = array<i64: 4, 32>}, {pipeline_mode = #tpu.pipeline_mode<synchronous>, transform_indices = @transform_2, window_bounds = array<i64: 1, 32>}, {pipeline_mode = #tpu.pipeline_mode<synchronous>, transform_indices = @transform_3, window_bounds = array<i64: 1, 32>}, {pipeline_mode = #tpu.pipeline_mode<synchronous>, transform_indices = @transform_4, window_bounds = array<i64: 1, 32>}, {pipeline_mode = #tpu.pipeline_mode<synchronous>, transform_indices = @transform_5, window_bounds = array<i64: 1, 32>}, {transform_indices = @transform_6, window_bounds = array<i64: 16, 32>}]} {
    %c0 = arith.constant 0 : index
    %c0_0 = arith.constant 0 : index
    %0 = vector.load %arg1[%c0, %c0_0] : memref<16x4xf32, #tpu.memory_space<vmem>>, vector<16x4xf32>
    %c0_1 = arith.constant 0 : index
    %c0_2 = arith.constant 0 : index
    %1 = vector.load %arg2[%c0_1, %c0_2] : memref<4x32xf32, #tpu.memory_space<vmem>>, vector<4x32xf32>
    %cst = arith.constant dense<0.000000e+00> : vector<16x32xf32>
    %2 = tpu.matmul %0, %1, %cst {dimension_numbers = #tpu.dot_dimension_numbers<[1], [0], [0], [1], [0, 0, 1, 1], [], []>} : vector<16x4xf32>, vector<4x32xf32>, vector<16x32xf32> -> vector<16x32xf32>
    %c0_3 = arith.constant 0 : index
    %c0_4 = arith.constant 0 : index
    %3 = vector.load %arg3[%c0_3, %c0_4] : memref<1x32xf32, #tpu.memory_space<vmem>>, vector<1x32xf32>
    %c0_5 = arith.constant 0 : index
    %c0_6 = arith.constant 0 : index
    %4 = vector.load %arg4[%c0_5, %c0_6] : memref<1x32xf32, #tpu.memory_space<vmem>>, vector<1x32xf32>
    %c0_7 = arith.constant 0 : index
    %c0_8 = arith.constant 0 : index
    %5 = vector.load %arg5[%c0_7, %c0_8] : memref<1x32xf32, #tpu.memory_space<vmem>>, vector<1x32xf32>
    %c0_9 = arith.constant 0 : index
    %c0_10 = arith.constant 0 : index
    %6 = vector.load %arg6[%c0_9, %c0_10] : memref<1x32xf32, #tpu.memory_space<vmem>>, vector<1x32xf32>
    %7 = vector.broadcast %5 : vector<1x32xf32> to vector<16x32xf32>
    %8 = arith.cmpf oge, %2, %7 : vector<16x32xf32>
    %9 = vector.broadcast %5 : vector<1x32xf32> to vector<16x32xf32>
    %10 = arith.cmpf olt, %2, %9 : vector<16x32xf32>
    %11 = vector.broadcast %4 : vector<1x32xf32> to vector<16x32xf32>
    %12 = arith.cmpf oge, %2, %11 : vector<16x32xf32>
    %13 = arith.andi %10, %12 : vector<16x32xi1>
    %14 = vector.broadcast %3 : vector<1x32xf32> to vector<16x32xf32>
    %15 = arith.subf %2, %14 : vector<16x32xf32>
    %16 = vector.broadcast %6 : vector<1x32xf32> to vector<16x32xf32>
    %17 = arith.mulf %15, %16 : vector<16x32xf32>
    %cst_11 = arith.constant 0.000000e+00 : f32
    %18 = vector.broadcast %cst_11 : f32 to vector<16x32xf32>
    %19 = arith.select %13, %17, %18 : vector<16x32xi1>, vector<16x32xf32>
    %cst_12 = arith.constant 1.000000e+00 : f32
    %20 = vector.broadcast %cst_12 : f32 to vector<16x32xf32>
    %21 = arith.select %8, %20, %19 : vector<16x32xi1>, vector<16x32xf32>
    %c0_13 = arith.constant 0 : index
    %c0_14 = arith.constant 0 : index
    %22 = vector.load %arg7[%c0_13, %c0_14] : memref<16x32xf32, #tpu.memory_space<vmem>>, vector<16x32xf32>
    tpu.vector_store %arg7[%c0_13, %c0_14], %21 {strides = array<i32>} : memref<16x32xf32, #tpu.memory_space<vmem>>, vector<16x32xf32>,
    return
  }
  func.func @transform_0(%arg0: i32) -> (i32, i32) {
    %c0_i32 = arith.constant 0 : i32
    %c0_i32_0 = arith.constant 0 : i32
    return %arg0, %c0_i32 : i32, i32
  }
  func.func @transform_1(%arg0: i32) -> (i32, i32) {
    %c0_i32 = arith.constant 0 : i32
    %c0_i32_0 = arith.constant 0 : i32
    %c0_i32_1 = arith.constant 0 : i32
    return %c0_i32, %c0_i32_0 : i32, i32
  }
  func.func @transform_2(%arg0: i32) -> (i32, i32) {
    %c0_i32 = arith.constant 0 : i32
    %c0_i32_0 = arith.constant 0 : i32
    %c0_i32_1 = arith.constant 0 : i32
    return %c0_i32, %c0_i32_0 : i32, i32
  }
  func.func @transform_3(%arg0: i32) -> (i32, i32) {
    %c0_i32 = arith.constant 0 : i32
    %c0_i32_0 = arith.constant 0 : i32
    %c0_i32_1 = arith.constant 0 : i32
    return %c0_i32, %c0_i32_0 : i32, i32
  }
  func.func @transform_4(%arg0: i32) -> (i32, i32) {
    %c0_i32 = arith.constant 0 : i32
    %c0_i32_0 = arith.constant 0 : i32
    %c0_i32_1 = arith.constant 0 : i32
    return %c0_i32, %c0_i32_0 : i32, i32
  }
  func.func @transform_5(%arg0: i32) -> (i32, i32) {
    %c0_i32 = arith.constant 0 : i32
    %c0_i32_0 = arith.constant 0 : i32
    %c0_i32_1 = arith.constant 0 : i32
    return %c0_i32, %c0_i32_0 : i32, i32
  }
  func.func @transform_6(%arg0: i32) -> (i32, i32) {
    %c0_i32 = arith.constant 0 : i32
    %c0_i32_0 = arith.constant 0 : i32
    return %arg0, %c0_i32 : i32, i32
  }
}

</mosaic_0001>

<bundles_post_ra>
// kernel: tpu_custom_call.1
= control target key start
LH: loop header
LB: loop body
LE: loop exit
PB: predicated region body
PF: predicated region fallthrough
CT: control target
= control target key end

     0   :  { %vm34_vm0 = vcmask 1043456   ;;  %vm27_vm1 = vcmask 31744   ;;  %s278_s0 = inlined_call_operand.vmem [shape: f32[16,4], index: 0, kind: input, shape index: {}]   ;;  %s279_s1 = inlined_call_operand.vmem [shape: f32[4,32], index: 1, kind: input, shape index: {}]   ;;  %s280_s2 = inlined_call_operand.vmem [shape: f32[1,32], index: 2, kind: input, shape index: {}]   ;;  %s281_s3 = inlined_call_operand.vmem [shape: f32[1,32], index: 3, kind: input, shape index: {}]   ;;  %s282_s4 = inlined_call_operand.vmem [shape: f32[1,32], index: 4, kind: input, shape index: {}]   ;;  %s283_s5 = inlined_call_operand.vmem [shape: f32[1,32], index: 5, kind: input, shape index: {}]   ;;  %s284_s6 = inlined_call_operand.hbm [shape: f32[16,32], index: 6, kind: output, shape index: {}]  }
   0x1   :  { %v26_v0 = vld [vmem:[%s279_s1] sm:$0xf]  ;;  %v25_v2 = vld [vmem:[%s278_s0 + $0x8] sm:$0xff] }
   0x2   :  { %v24_v1 = vld [vmem:[%s278_s0] sm:$0xff]  ;;  %186 = vmatprep.subr.msk.mxu0 %vm34_vm0, %v26_v0 }
   0x3   :  { %188 = vmatprep.mubr.msk.f32.mxu0 %vm27_vm1, %v24_v1 }
   0x4   :  { %11 = vsyncpa [#allocation3], 0  ;;  %187 = vmatpush3.msk.msra.mxu0 %vm34_vm0, %v26_v0  ;;  %v181_v3 = vld [vmem:[%s280_s2] ss:$0 sm:$0xff]  ;;  %s216_s2 = smov [#allocation2]   ;;  %vm157_vm7 = vcmask 261120  }
   0x5   :  { %189 = vmatmul.mubr.msk.f32.vlgmr.msra.gmra.mxu0 %vm27_vm1, %v25_v2  ;;  %v179_v4 = vld [vmem:[%s282_s4] ss:$0 sm:$0xff]  ;;  %s165_s9 = sshll.u32 %s216_s2, 4  ;;  %s166_s9 = int_to_ptr.vmem [resolvable:$true] %s165_s9 }
   0x6   :  { %v180_v5 = vld [vmem:[%s281_s3] ss:$0 sm:$0xff]  ;;  %s194_s3 = scalar_lea.vmem %s166_s9, 256  ;;  %p199_p1 = scmp.lt.s32.totalorder %s166_s9, %s166_s9 }
   0x7   :  { %v182_v7 = vld [vmem:[%s283_s5] ss:$0 sm:$0xff]  ;;  %p195_p0 = scmp.ne.s32.totalorder %s166_s9, %s194_s3  ;;  %p200_p2 = scmp.lt.s32.totalorder %s194_s3, %s194_s3 }
   0x9   :  { %p201_p3 = por %p200_p2, %p199_p1 }
   0xb   :  { %p202_p4 = pnand %p201_p3, %p195_p0 }
  0xc5   :  { %v190_v6 = vpop.f32.mrf.mxu0 }
  0xc6   :  { %v144_v8 = vsub.f32 %v190_v6, %v181_v3  ;;  %vm126_vm2 = vcmp.lt.f32.partialorder %v190_v6, %v179_v4  ;;  %vm134_vm3 = vcmp.ge.f32.partialorder %v190_v6, %v180_v5  ;;  %vm124_vm8 = vcmp.ge.f32.partialorder %v190_v6, %v179_v4 }
  0xc7   :  { %v104_v9 = vpop.f32.mrf.mxu0  ;;  %vm136_vm6 = vmand %vm126_vm2, %vm134_vm3 }
  0xc8   :  { %vm125_vm4 = vcmp.lt.f32.partialorder %v104_v9, %v179_v4  ;;  %vm133_vm5 = vcmp.ge.f32.partialorder %v104_v9, %v180_v5  ;;  %v143_v10 = vsub.f32 %v104_v9, %v181_v3  ;;  %v152_v11 = vmul.f32 %v182_v7, %v144_v8 }
  0xc9   :  { %vm135_vm9 = vmand %vm125_vm4, %vm133_vm5  ;;  %vm123_vm10 = vcmp.ge.f32.partialorder %v104_v9, %v179_v4 }
  0xca   :  { %v151_v12 = vmul.f32 %v182_v7, %v143_v10  ;;  %v154_v13 = vsel %vm136_vm6, %v152_v11, 0.0 }
  0xcb   :  { %v156_v15 = vsel %vm124_vm8, 1.0, %v154_v13 }
  0xcc   :  { %v153_v14 = vsel %vm135_vm9, %v151_v12, 0.0  ;;  %159 = vst.msk [vmem:[#allocation2 + $0x8] sm:$0xff] %vm157_vm7, %v156_v15 }
  0xcd   :  { %v155_v16 = vsel %vm123_vm10, 1.0, %v153_v14 }
  0xce   :  { %158 = vst.msk [vmem:[#allocation2] sm:$0xff] %vm157_vm7, %v155_v16 }
  0xcf   :  { %205 = shalt.err (!%p202_p4)
}
  0xd0   :  { %s217_s4 = smov 128   ;;  %s218_s5 = smov 8  }
  0xd1   :  { %171 = dma.vmem_to_hbm [thread:$0]  %s166_s9, 256, %s284_s6, [#allocation3], %s217_s4, %s217_s4, %s218_s5  }
  0xd2   :  { %214 = dma.done.wait [#allocation3], 256  }
  0xd3   :  { %215 = vsyncadd [#allocation3], 4294967040 }
  0xd4   :  { %175 = vsyncpa [#allocation3], 1 }

</bundles_post_ra>
